<compile_context>
chip_gen: v7x
topology: tpu7x:2x2x1
jax: 0.10.0
libtpu: 0.0.40
codegen_flags: <defaults>
</compile_context>

<pallas_src>
import functools

import jax
import jax.numpy as jnp
from jax import lax
from jax.experimental import pallas as pl
from jax.experimental.pallas import tpu as pltpu

EPS = 0.1
IGNORE_INDEX = -100


def _lsce_kernel(logits_ref, target_ref, out_ref,
                 smooth_acc, picked_acc, nvalid_acc,
                 *, n_rows, eps, ignore_index):
    i = pl.program_id(0)
    num_tiles = pl.num_programs(0)

    @pl.when(i == 0)
    def _init():
        smooth_acc[...] = jnp.zeros_like(smooth_acc)
        picked_acc[...] = jnp.zeros_like(picked_acc)
        nvalid_acc[...] = jnp.zeros_like(nvalid_acc)

    x = logits_ref[...].astype(jnp.float32)               # [TILE_N, C]
    tn, c = x.shape

    # Numerically stable per-row logZ = m + log(sum(exp(x - m))).
    m = jnp.max(x, axis=-1, keepdims=True)                # [TILE_N, 1]
    sumexp = jnp.sum(jnp.exp(x - m), axis=-1, keepdims=True)
    logz = m + jnp.log(sumexp)                            # [TILE_N, 1]

    # Mask rows that are padding (row index >= real N).
    row_id = i * tn + lax.broadcasted_iota(jnp.int32, (tn, 1), 0)
    row_valid = row_id < n_rows                           # [TILE_N, 1]

    # Smoothing term numerator per row:
    #   -sum_j log_preds[j] = C * logz - sum_j x[j]      (no log_preds array)
    row_sum_x = jnp.sum(x, axis=-1, keepdims=True)        # [TILE_N, 1]
    smooth_col = jnp.where(row_valid, jnp.float32(c) * logz - row_sum_x, 0.0)

    # NLL pick per row:  -log_pred[t] = logz - x[t]
    tgt = target_ref[...]                                 # [TILE_N, 1] int32
    tvalid = tgt != ignore_index                          # [TILE_N, 1]
    col = lax.broadcasted_iota(jnp.int32, (tn, c), 1)     # class ids per lane
    x_at_t = jnp.sum(jnp.where((col == tgt) & tvalid, x, 0.0),
                     axis=-1, keepdims=True)              # [TILE_N, 1]
    picked_col = jnp.where(tvalid, logz - x_at_t, 0.0)
    nvalid_col = tvalid.astype(jnp.float32)

    # Per-tile partial sums live in VMEM scratch; only lane-reduced columns
    # are accumulated (no 2-D scalar reduce in the steady state).
    smooth_acc[...] += smooth_col
    picked_acc[...] += picked_col
    nvalid_acc[...] += nvalid_col

    @pl.when(i == num_tiles - 1)
    def _finalize():
        smooth_sum = jnp.sum(smooth_acc[...])
        picked_sum = jnp.sum(picked_acc[...])
        nvalid = jnp.sum(nvalid_acc[...])
        smooth = smooth_sum / jnp.float32(n_rows)          # mean over ALL rows
        nll = picked_sum / nvalid                          # mean over valid rows
        total = eps * smooth / jnp.float32(c) + (1.0 - eps) * nll
        out_ref[...] = total.reshape(1, 1)


def label_smoothing_cross_entropy(logits, target, *, tile_n=256,
                                  eps=EPS, ignore_index=IGNORE_INDEX):
    """logits: [N, C] float (f32/bf16), target: [N] int -> scalar f32 loss."""
    n, c = logits.shape

    # Tile the row axis; sublane-align the tile and pad N up to a multiple.
    tile_n = max(8, (min(tile_n, n) + 7) // 8 * 8)
    n_pad = pl.cdiv(n, tile_n) * tile_n
    if n_pad != n:
        logits = jnp.pad(logits, ((0, n_pad - n), (0, 0)))
        target = jnp.pad(target, (0, n_pad - n), constant_values=ignore_index)
    tgt2d = target.astype(jnp.int32).reshape(n_pad, 1)

    grid = (n_pad // tile_n,)
    kernel = functools.partial(_lsce_kernel, n_rows=n, eps=eps,
                               ignore_index=ignore_index)

    out = pl.pallas_call(
        kernel,
        out_shape=jax.ShapeDtypeStruct((1, 1), jnp.float32),
        grid_spec=pltpu.PrefetchScalarGridSpec(
            num_scalar_prefetch=0,
            grid=grid,
            in_specs=[
                pl.BlockSpec((tile_n, c), lambda i: (i, 0)),   # logits tile
                pl.BlockSpec((tile_n, 1), lambda i: (i, 0)),   # target tile
            ],
            # Scalar output written once at the last grid step (constant
            # block index -> single HBM writeback at the end).
            out_specs=pl.BlockSpec((1, 1), lambda i: (0, 0)),
            scratch_shapes=[
                pltpu.VMEM((tile_n, 1), jnp.float32),  # smooth partials
                pltpu.VMEM((tile_n, 1), jnp.float32),  # picked partials
                pltpu.VMEM((tile_n, 1), jnp.float32),  # valid counts
            ],
        ),
        compiler_params=pltpu.CompilerParams(
            # Single grid axis carries the accumulators -> "arbitrary".
            dimension_semantics=("arbitrary",),
        ),
    )(logits, tgt2d)
    return out[0, 0]


def _reference(logits, target):
    # pure-JAX reference mirroring the PyTorch module
    logits = logits.astype(jnp.float32)
    n, c = logits.shape
    log_preds = jax.nn.log_softmax(logits, axis=-1)
    smooth = jnp.mean(-jnp.sum(log_preds, axis=-1))
    valid = target != IGNORE_INDEX
    safe_t = jnp.where(valid, target, 0)
    picked = -jnp.take_along_axis(log_preds, safe_t[:, None], axis=-1)[:, 0]
    nll = jnp.sum(jnp.where(valid, picked, 0.0)) / jnp.sum(valid.astype(jnp.float32))
    return EPS * smooth / c + (1.0 - EPS) * nll


if __name__ == "__main__":
    key = jax.random.PRNGKey(0)
    k1, k2 = jax.random.split(key)
    N, C = 16, 128
    logits = jax.random.normal(k1, (N, C), dtype=jnp.float32)
    target = jax.random.randint(k2, (N,), 0, C, dtype=jnp.int32)
    target = target.at[3].set(IGNORE_INDEX)  # exercise ignore_index path

    # tile_n=8 -> grid of 2 steps: exercises init / accumulate / finalize.
    loss = label_smoothing_cross_entropy(logits, target, tile_n=8)
    jax.block_until_ready(loss)

    ref = _reference(logits, target)
    assert jnp.allclose(loss, ref, rtol=1e-5, atol=1e-5), (loss, ref)
    print("KERNEL_OK")
</pallas_src>

<mosaic_0001>
module attributes {stable_mosaic.version = 11 : i64} {
  func.func @_lsce_kernel(%arg0: i32, %arg1: memref<8x128xf32, #tpu.memory_space<vmem>>, %arg2: memref<8x1xi32, #tpu.memory_space<vmem>>, %arg3: memref<1x1xf32, #tpu.memory_space<vmem>>, %arg4: memref<8x1xf32, #tpu.memory_space<vmem>>, %arg5: memref<8x1xf32, #tpu.memory_space<vmem>>, %arg6: memref<8x1xf32, #tpu.memory_space<vmem>>) attributes {dimension_semantics = [#tpu.dimension_semantics<arbitrary>], iteration_bounds = array<i64: 2>, scalar_prefetch = 0 : i64, scratch_operands = 3 : i64, tpu.core_type = #tpu.core_type<tc>, window_params = [{transform_indices = @transform_0, window_bounds = array<i64: 8, 128>}, {transform_indices = @transform_1, window_bounds = array<i64: 8, 1>}, {pipeline_mode = #tpu.pipeline_mode<synchronous>, transform_indices = @transform_2, window_bounds = array<i64: 1, 1>}]} {
    %c0_i32 = arith.constant 0 : i32
    %0 = arith.cmpi eq, %arg0, %c0_i32 : i32
    %1 = arith.extui %0 : i1 to i32
    %c0_i32_0 = arith.constant 0 : i32
    %2 = arith.cmpi ne, %1, %c0_i32_0 : i32
    scf.if %2 {
      %cst_24 = arith.constant 0.000000e+00 : f32
      %55 = vector.broadcast %cst_24 : f32 to vector<8x1xf32>
      %c0_25 = arith.constant 0 : index
      %c0_26 = arith.constant 0 : index
      %56 = vector.load %arg4[%c0_25, %c0_26] : memref<8x1xf32, #tpu.memory_space<vmem>>, vector<8x1xf32>
      tpu.vector_store %arg4[%c0_25, %c0_26], %55 {strides = array<i32>} : memref<8x1xf32, #tpu.memory_space<vmem>>, vector<8x1xf32>,
      %cst_27 = arith.constant 0.000000e+00 : f32
      %57 = vector.broadcast %cst_27 : f32 to vector<8x1xf32>
      %c0_28 = arith.constant 0 : index
      %c0_29 = arith.constant 0 : index
      %58 = vector.load %arg5[%c0_28, %c0_29] : memref<8x1xf32, #tpu.memory_space<vmem>>, vector<8x1xf32>
      tpu.vector_store %arg5[%c0_28, %c0_29], %57 {strides = array<i32>} : memref<8x1xf32, #tpu.memory_space<vmem>>, vector<8x1xf32>,
      %cst_30 = arith.constant 0.000000e+00 : f32
      %59 = vector.broadcast %cst_30 : f32 to vector<8x1xf32>
      %c0_31 = arith.constant 0 : index
      %c0_32 = arith.constant 0 : index
      %60 = vector.load %arg6[%c0_31, %c0_32] : memref<8x1xf32, #tpu.memory_space<vmem>>, vector<8x1xf32>
      tpu.vector_store %arg6[%c0_31, %c0_32], %59 {strides = array<i32>} : memref<8x1xf32, #tpu.memory_space<vmem>>, vector<8x1xf32>,
    } else {
    }
    %c0 = arith.constant 0 : index
    %c0_1 = arith.constant 0 : index
    %3 = vector.load %arg1[%c0, %c0_1] : memref<8x128xf32, #tpu.memory_space<vmem>>, vector<8x128xf32>
    %cst = arith.constant dense<0xFF800000> : vector<8xf32>
    %4 = vector.multi_reduction <maximumf>, %3, %cst [1] : vector<8x128xf32> to vector<8xf32>
    %5 = vector.shape_cast %4 : vector<8xf32> to vector<8x1xf32>
    %6 = vector.broadcast %5 : vector<8x1xf32> to vector<8x128xf32>
    %7 = arith.subf %3, %6 : vector<8x128xf32>
    %8 = math.exp %7 : vector<8x128xf32>
    %cst_2 = arith.constant dense<0.000000e+00> : vector<8xf32>
    %9 = vector.multi_reduction <add>, %8, %cst_2 [1] : vector<8x128xf32> to vector<8xf32>
    %10 = vector.shape_cast %9 : vector<8xf32> to vector<8x1xf32>
    %11 = math.log %10 : vector<8x1xf32>
    %12 = arith.addf %5, %11 : vector<8x1xf32>
    %c8_i32 = arith.constant 8 : i32
    %13 = arith.muli %arg0, %c8_i32 : i32
    %14 = tpu.iota {dimensions = array<i32: 0>} : vector<8x1xi32>
    %15 = vector.broadcast %13 : i32 to vector<8x1xi32>
    %16 = arith.addi %15, %14 : vector<8x1xi32>
    %c16_i32 = arith.constant 16 : i32
    %17 = vector.broadcast %c16_i32 : i32 to vector<8x1xi32>
    %18 = arith.cmpi slt, %16, %17 : vector<8x1xi32>
    %cst_3 = arith.constant dense<0.000000e+00> : vector<8xf32>
    %19 = vector.multi_reduction <add>, %3, %cst_3 [1] : vector<8x128xf32> to vector<8xf32>
    %20 = vector.shape_cast %19 : vector<8xf32> to vector<8x1xf32>
    %cst_4 = arith.constant 1.280000e+02 : f32
    %21 = vector.broadcast %cst_4 : f32 to vector<8x1xf32>
    %22 = arith.mulf %21, %12 : vector<8x1xf32>
    %23 = arith.subf %22, %20 : vector<8x1xf32>
    %cst_5 = arith.constant 0.000000e+00 : f32
    %24 = vector.broadcast %cst_5 : f32 to vector<8x1xf32>
    %25 = arith.select %18, %23, %24 : vector<8x1xi1>, vector<8x1xf32>
    %c0_6 = arith.constant 0 : index
    %c0_7 = arith.constant 0 : index
    %26 = vector.load %arg2[%c0_6, %c0_7] : memref<8x1xi32, #tpu.memory_space<vmem>>, vector<8x1xi32>
    %c-100_i32 = arith.constant -100 : i32
    %27 = vector.broadcast %c-100_i32 : i32 to vector<8x1xi32>
    %28 = arith.cmpi ne, %26, %27 : vector<8x1xi32>
    %29 = tpu.iota {dimensions = array<i32: 1>} : vector<8x128xi32>
    %30 = vector.broadcast %26 : vector<8x1xi32> to vector<8x128xi32>
    %31 = arith.cmpi eq, %29, %30 : vector<8x128xi32>
    %32 = vector.broadcast %28 : vector<8x1xi1> to vector<8x128xi1>
    %33 = arith.andi %31, %32 : vector<8x128xi1>
    %cst_8 = arith.constant 0.000000e+00 : f32
    %34 = vector.broadcast %cst_8 : f32 to vector<8x128xf32>
    %35 = arith.select %33, %3, %34 : vector<8x128xi1>, vector<8x128xf32>
    %cst_9 = arith.constant dense<0.000000e+00> : vector<8xf32>
    %36 = vector.multi_reduction <add>, %35, %cst_9 [1] : vector<8x128xf32> to vector<8xf32>
    %37 = vector.shape_cast %36 : vector<8xf32> to vector<8x1xf32>
    %38 = arith.subf %12, %37 : vector<8x1xf32>
    %cst_10 = arith.constant 0.000000e+00 : f32
    %39 = vector.broadcast %cst_10 : f32 to vector<8x1xf32>
    %40 = arith.select %28, %38, %39 : vector<8x1xi1>, vector<8x1xf32>
    %41 = arith.extui %28 : vector<8x1xi1> to vector<8x1xi32>
    %42 = arith.sitofp %41 : vector<8x1xi32> to vector<8x1xf32>
    %c0_11 = arith.constant 0 : index
    %c0_12 = arith.constant 0 : index
    %43 = vector.load %arg4[%c0_11, %c0_12] : memref<8x1xf32, #tpu.memory_space<vmem>>, vector<8x1xf32>
    %44 = arith.addf %43, %25 : vector<8x1xf32>
    %c0_13 = arith.constant 0 : index
    %c0_14 = arith.constant 0 : index
    %45 = vector.load %arg4[%c0_13, %c0_14] : memref<8x1xf32, #tpu.memory_space<vmem>>, vector<8x1xf32>
    tpu.vector_store %arg4[%c0_13, %c0_14], %44 {strides = array<i32>} : memref<8x1xf32, #tpu.memory_space<vmem>>, vector<8x1xf32>,
    %c0_15 = arith.constant 0 : index
    %c0_16 = arith.constant 0 : index
    %46 = vector.load %arg5[%c0_15, %c0_16] : memref<8x1xf32, #tpu.memory_space<vmem>>, vector<8x1xf32>
    %47 = arith.addf %46, %40 : vector<8x1xf32>
    %c0_17 = arith.constant 0 : index
    %c0_18 = arith.constant 0 : index
    %48 = vector.load %arg5[%c0_17, %c0_18] : memref<8x1xf32, #tpu.memory_space<vmem>>, vector<8x1xf32>
    tpu.vector_store %arg5[%c0_17, %c0_18], %47 {strides = array<i32>} : memref<8x1xf32, #tpu.memory_space<vmem>>, vector<8x1xf32>,
    %c0_19 = arith.constant 0 : index
    %c0_20 = arith.constant 0 : index
    %49 = vector.load %arg6[%c0_19, %c0_20] : memref<8x1xf32, #tpu.memory_space<vmem>>, vector<8x1xf32>
    %50 = arith.addf %49, %42 : vector<8x1xf32>
    %c0_21 = arith.constant 0 : index
    %c0_22 = arith.constant 0 : index
    %51 = vector.load %arg6[%c0_21, %c0_22] : memref<8x1xf32, #tpu.memory_space<vmem>>, vector<8x1xf32>
    tpu.vector_store %arg6[%c0_21, %c0_22], %50 {strides = array<i32>} : memref<8x1xf32, #tpu.memory_space<vmem>>, vector<8x1xf32>,
    %c1_i32 = arith.constant 1 : i32
    %52 = arith.cmpi eq, %arg0, %c1_i32 : i32
    %53 = arith.extui %52 : i1 to i32
    %c0_i32_23 = arith.constant 0 : i32
    %54 = arith.cmpi ne, %53, %c0_i32_23 : i32
    scf.if %54 {
      %c0_24 = arith.constant 0 : index
      %c0_25 = arith.constant 0 : index
      %55 = vector.load %arg4[%c0_24, %c0_25] : memref<8x1xf32, #tpu.memory_space<vmem>>, vector<8x1xf32>
      %56 = vector.shape_cast %55 : vector<8x1xf32> to vector<1x8x1xf32>
      %cst_26 = arith.constant dense<0.000000e+00> : vector<1xf32>
      %57 = vector.multi_reduction <add>, %56, %cst_26 [1, 2] : vector<1x8x1xf32> to vector<1xf32>
      %58 = vector.shape_cast %57 : vector<1xf32> to vector<1x1x1xf32>
      %59 = vector.extract %58[0, 0, 0] : f32 from vector<1x1x1xf32>
      %c0_27 = arith.constant 0 : index
      %c0_28 = arith.constant 0 : index
      %60 = vector.load %arg5[%c0_27, %c0_28] : memref<8x1xf32, #tpu.memory_space<vmem>>, vector<8x1xf32>
      %61 = vector.shape_cast %60 : vector<8x1xf32> to vector<1x8x1xf32>
      %cst_29 = arith.constant dense<0.000000e+00> : vector<1xf32>
      %62 = vector.multi_reduction <add>, %61, %cst_29 [1, 2] : vector<1x8x1xf32> to vector<1xf32>
      %63 = vector.shape_cast %62 : vector<1xf32> to vector<1x1x1xf32>
      %64 = vector.extract %63[0, 0, 0] : f32 from vector<1x1x1xf32>
      %c0_30 = arith.constant 0 : index
      %c0_31 = arith.constant 0 : index
      %65 = vector.load %arg6[%c0_30, %c0_31] : memref<8x1xf32, #tpu.memory_space<vmem>>, vector<8x1xf32>
      %66 = vector.shape_cast %65 : vector<8x1xf32> to vector<1x8x1xf32>
      %cst_32 = arith.constant dense<0.000000e+00> : vector<1xf32>
      %67 = vector.multi_reduction <add>, %66, %cst_32 [1, 2] : vector<1x8x1xf32> to vector<1xf32>
      %68 = vector.shape_cast %67 : vector<1xf32> to vector<1x1x1xf32>
      %69 = vector.extract %68[0, 0, 0] : f32 from vector<1x1x1xf32>
      %cst_33 = arith.constant 1.600000e+01 : f32
      %70 = arith.divf %59, %cst_33 : f32
      %71 = arith.divf %64, %69 : f32
      %cst_34 = arith.constant 1.000000e-01 : f32
      %72 = arith.mulf %cst_34, %70 : f32
      %cst_35 = arith.constant 1.280000e+02 : f32
      %73 = arith.divf %72, %cst_35 : f32
      %cst_36 = arith.constant 0.899999976 : f32
      %74 = arith.mulf %cst_36, %71 : f32
      %75 = arith.addf %73, %74 : f32
      %76 = vector.broadcast %75 : f32 to vector<1x1xf32>
      %c0_37 = arith.constant 0 : index
      %c0_38 = arith.constant 0 : index
      %77 = vector.load %arg3[%c0_37, %c0_38] : memref<1x1xf32, #tpu.memory_space<vmem>>, vector<1x1xf32>
      tpu.vector_store %arg3[%c0_37, %c0_38], %76 {strides = array<i32>} : memref<1x1xf32, #tpu.memory_space<vmem>>, vector<1x1xf32>,
    } else {
    }
    return
  }
  func.func @transform_0(%arg0: i32) -> (i32, i32) {
    %c0_i32 = arith.constant 0 : i32
    %c0_i32_0 = arith.constant 0 : i32
    return %arg0, %c0_i32 : i32, i32
  }
  func.func @transform_1(%arg0: i32) -> (i32, i32) {
    %c0_i32 = arith.constant 0 : i32
    %c0_i32_0 = arith.constant 0 : i32
    return %arg0, %c0_i32 : i32, i32
  }
  func.func @transform_2(%arg0: i32) -> (i32, i32) {
    %c0_i32 = arith.constant 0 : i32
    %c0_i32_0 = arith.constant 0 : i32
    %c0_i32_1 = arith.constant 0 : i32
    return %c0_i32, %c0_i32_0 : i32, i32
  }
}

</mosaic_0001>

<bundles_post_ra>
// kernel: tpu_custom_call.1
= control target key start
LH: loop header
LB: loop body
LE: loop exit
PB: predicated region body
PF: predicated region fallthrough
CT: control target
= control target key end

     0   :  { %7 = vsyncpa [#allocation6], 0  ;;  %s420_s9 = smov 0   ;;  %s476_s0 = inlined_call_operand.vmem [shape: f32[16,128], index: 0, kind: input, shape index: {}]   ;;  %s477_s1 = inlined_call_operand.vmem [shape: s32[16,1], index: 1, kind: input, shape index: {}]   ;;  %s478_s2 = inlined_call_operand.hbm [shape: f32[1,1], index: 2, kind: output, shape index: {}]  }
   0x1 LB: > { %s426_s10 = sadd.s32 4294967295, %s399_s9   ;;  %p318_p0 = scmp.ge.s32.totalorder %s399_s9, 1  ;;  %s399_s9 = sphi %s420_s9, %s13_s9  }
   0x2   : > { %p116_p1 = scmp.lt.s32.totalorder %s399_s9, 3 }
   0x4   : > { %p117_p2 = pnand %p318_p0, %p116_p1 }
   0x5   : > { %p136_p3 = scmp.lt.s32.totalorder (!%p117_p2), %s426_s10, 1  ;;  %p321_p4 = scmp.ne.s32.totalorder (!%p117_p2), %s426_s10, 0 }
   0x6   : > { %120 = sbr.rel (%p117_p2) target bundleno = 656 (0x290), region = 28 }
   0xd   : > { %s137_s11 = scalar_select %p136_p3, %s426_s10, 1 }
   0xe   : > { %147 = sbr.rel (%p321_p4) target bundleno = 21 (0x15), region = 32  ;;  %vm148_vm0 = vcmask (!%p321_p4), 7168   ;;  %v401_v0 = vmov (!%p321_p4), 0.0  }
   0xf   : > { %s319_s12 = sshll.u32 %s137_s11, 3  ;;  %149 = vst.msk [vmem:[#allocation2] sm:$0xff] (!%p321_p4), %vm148_vm0, %v401_v0  ;;  %150 = vst.msk [vmem:[#allocation3] sm:$0xff] (!%p321_p4), %vm148_vm0, %v401_v0 }
  0x10   : > { %s139_s15 = scalar_lea.vmem %s476_s0, %s319_s12  ;;  %s143_s18 = scalar_lea.vmem %s477_s1, %s319_s12  ;;  %151 = vst.msk [vmem:[#allocation4] sm:$0xff] (!%p321_p4), %vm148_vm0, %v401_v0 }
  0x15 PF: > { %v152_v1 = vld [vmem:[%s139_s15] sm:$0xff]  ;;  %v402_v3 = vmov 0   ;;  %v164_v8 = vlaneseq  ;;  %v403_v14 = vmov 0.0   ;;  %vm196_vm5 = vcmask 7168   ;;  %s322_s19 = sshll.u32 %s426_s10, 3  ;;  %p324_p5 = scmp.ne.s32.totalorder %s426_s10, 1 }
  0x16   : > { %v174_v2 = vld [vmem:[%s143_s18] sm:$0xff]  ;;  %153 = vmax.xlane.f32.xlu0 %v152_v1  ;;  %356 = vset.pattern.permute.xlu1 %v402_v3  ;;  %v166_v21 = vstv %s322_s19  ;;  %v198_v28 = vld [vmem:[#allocation3] sm:$0xff]  ;;  %vm255_vm7 = vcmask (!%p324_p5), 0  }
  0x17   : > { %vm175_vm1 = vcmp.ne.s32.totalorder %v174_v2, 4294967196  ;;  %355 = vset.pattern.permute.xlu0 %v402_v3  ;;  %v177_v9 = vand.u32 127, %v164_v8  ;;  %v201_v16 = vld [vmem:[#allocation4] sm:$0xff]  ;;  %v165_v20 = vshrl.u32 %v164_v8, 7  ;;  %v194_v30 = vld [vmem:[#allocation2] sm:$0xff] }
  0x18   : > { %v182_v4 = vsel %vm175_vm1, 1, %v402_v3  ;;  %v323_v15 = vsel %vm175_vm1, 1.0, %v403_v14 }
  0x19   : > { %184 = vperm.xlu1 %356, %v182_v4   ;;  %v202_v17 = vadd.f32 %v323_v15, %v201_v16  ;;  %v167_v24 = vadd.s32 %v166_v21, %v165_v20 }
  0x1b   : > { %203 = vst.msk [vmem:[#allocation4] sm:$0xff] %vm196_vm5, %v202_v17  ;;  %vm168_vm6 = vcmp.lt.s32.totalorder %v167_v24, 16 }
  0x22   : > { %v230_v36 = vld [vmem:[#allocation4] sm:$0xff] (!%p324_p5) }
  0x23   : > { %v231_v39 = vsel (!%p324_p5), %vm196_vm5, %v230_v36, 0.0 }
  0x2c   : > { %179 = vperm.xlu0 %355, %v174_v2  }
  0x98   : > { %v185_v10 = vpop.permute.xlu1 %184 }
  0x99   : > { %vm186_vm2 = vcmp.eq.s32.totalorder %v185_v10, 1 }
  0xa3   : > { %v154_v5 = vpop.xlane.xlu0 %153 }
  0xa4   : > { %v155_v6 = vsub.f32 %v152_v1, %v154_v5 }
  0xa6   : > { %v156_v7 = vmul.f32 1.442695, %v155_v6 }
  0xa8   : > { %357 = vpow2.f32 %v156_v7 }
  0xab   : > { %v180_v11 = vpop.permute.xlu0 %179 }
  0xac   : > { %vm181_vm3 = vcmp.eq.s32.totalorder %v177_v9, %v180_v11 }
  0xad   : > { %vm187_vm4 = vmand %vm181_vm3, %vm186_vm2 }
  0xae   : > { %v188_v13 = vsel %vm187_vm4, %v152_v1, 0.0 }
  0xb2   : > { %v358_v12 = vpop.eup %357 }
  0xb3   : > { %158 = vadd.xlane.f32.xlu1 %v358_v12 }
  0xb7   : > { %169 = vadd.xlane.f32.xlu1 %v152_v1 }
  0xbb   : > { %189 = vadd.xlane.f32.xlu1 %v188_v13 }
  0xbf   : > { %232 = vadd.xlane.f32.xlu1 (!%p324_p5), %v231_v39 }
 0x140   : > { %v159_v18 = vpop.xlane.xlu1 %158 }
 0x141   : > { %359 = vlog2.f32 %v159_v18 }
 0x144   : > { %v170_v19 = vpop.xlane.xlu1 %169 }
 0x148   : > { %v190_v25 = vpop.xlane.xlu1 %189 }
 0x14b   : > { %v360_v22 = vpop.eup %359 }
 0x14c   : > { %v161_v23 = vmul.f32 0.6931472, %v360_v22  ;;  %v233_v42 = vpop.xlane.xlu1 (!%p324_p5), %232 }
 0x14d   : > { %v234_v44 = vrot.slane (!%p324_p5), %v233_v42, 4 }
 0x14e   : > { %v162_v26 = vadd.f32 %v161_v23, %v154_v5 }
 0x14f   : > { %v235_v46 = vadd.f32 (!%p324_p5), %v234_v44, %v233_v42 }
 0x150   : > { %v171_v27 = vmul.f32 128.0, %v162_v26  ;;  %v191_v29 = vsub.f32 %v162_v26, %v190_v25 }
 0x151   : > { %207 = sbr.rel (%p324_p5) target bundleno = 631 (0x277), region = 36  ;;  %v236_v49 = vrot.slane (!%p324_p5), %v235_v46, 2 }
 0x152   : > { %v172_v31 = vsub.f32 %v171_v27, %v170_v19  ;;  %v192_v32 = vsel %vm175_vm1, %v191_v29, 0.0 }
 0x153   : > { %v199_v33 = vadd.f32 %v198_v28, %v192_v32  ;;  %v237_v54 = vadd.f32 (!%p324_p5), %v236_v49, %v235_v46 }
 0x154   : > { %v173_v34 = vsel %vm168_vm6, %v172_v31, 0.0 }
 0x155   : > { %v195_v35 = vadd.f32 %v194_v30, %v173_v34  ;;  %200 = vst.msk [vmem:[#allocation3] sm:$0xff] %vm196_vm5, %v199_v33  ;;  %v238_v59 = vrot.slane (!%p324_p5), %v237_v54, 1 }
 0x157   : > { %197 = vst.msk [vmem:[#allocation2] sm:$0xff] %vm196_vm5, %v195_v35  ;;  %v239_v62 = vadd.f32 (!%p324_p5), %v238_v59, %v237_v54 }
 0x15c   : > { %v219_v38 = vld [vmem:[#allocation3] sm:$0xff] }
 0x15d   : > { %v220_v41 = vsel %vm196_vm5, %v219_v38, 0.0 }
 0x15e   : > { %v208_v37 = vld [vmem:[#allocation2] sm:$0xff] }
 0x15f   : > { %v209_v40 = vsel %vm196_vm5, %v208_v37, 0.0 }
 0x160   : > { %210 = vadd.xlane.f32.xlu0 %v209_v40 }
 0x164   : > { %221 = vadd.xlane.f32.xlu0 %v220_v41 }
 0x1ed   : > { %v211_v43 = vpop.xlane.xlu0 %210 }
 0x1ee   : > { %v212_v45 = vrot.slane %v211_v43, 4 }
 0x1f0   : > { %v213_v47 = vadd.f32 %v212_v45, %v211_v43 }
 0x1f1   : > { %v222_v48 = vpop.xlane.xlu0 %221 }
 0x1f2   : > { %v214_v50 = vrot.slane %v213_v47, 2  ;;  %v223_v51 = vrot.slane %v222_v48, 4 }
 0x1f4   : > { %v224_v52 = vadd.f32 %v223_v51, %v222_v48  ;;  %v215_v53 = vadd.f32 %v214_v50, %v213_v47 }
 0x1f6   : > { %v225_v55 = vrot.slane %v224_v52, 2  ;;  %v216_v56 = vrot.slane %v215_v53, 1 }
 0x1f8   : > { %v226_v57 = vadd.f32 %v225_v55, %v224_v52  ;;  %v217_v58 = vadd.f32 %v216_v56, %v215_v53 }
 0x1fa   : > { %329 = vpush %v217_v58  ;;  %v227_v60 = vrot.slane %v226_v57, 1 }
 0x1fc   : > { %v228_v61 = vadd.f32 %v227_v60, %v226_v57 }
 0x1fe   : > { %331 = vpush %v228_v61 }
 0x1ff   : > { %333 = vpush %v239_v62 }
 0x22b   : > { %s330_s20 = spop %329 }
 0x22c   : > { %s243_s23 = smul.f32 0.0625, %s330_s20 }
 0x22e   : > { %s248_s24 = smul.f32 0.1, %s243_s23 }
 0x22f   : > { %s332_s21 = spop %331 }
 0x230   : > { %s334_s22 = spop %333  ;;  %s251_s27 = smul.f32 0.0078125, %s248_s24 }
 0x231   : > { %v244_v63 = vstv %s334_s22 }
 0x232   : > { %361 = vrcp.f32 %v244_v63 }
 0x23c   : > { %v362_v0 = vpop.eup %361 }
 0x23d   : > { %335 = vpush %v362_v0 }
 0x26e   : > { %s336_s25 = spop %335 }
 0x26f   : > { %s247_s26 = smul.f32 %s336_s25, %s332_s21 }
 0x271   : > { %s252_s28 = smul.f32 0.9, %s247_s26 }
 0x273   : > { %s253_s29 = sadd.f32 %s252_s28, %s251_s27 }
 0x275   : > { %v254_v1 = vstv %s253_s29 }
 0x276   : > { %256 = vst.msk [vmem:[#allocation5] sm:$0x1] %vm255_vm7, %v254_v1 }
 0x277 PF: > { %p341_p6 = scmp.eq.s32.totalorder %s426_s10, 1  ;;  %s404_s30 = smov [#allocation5]  }
 0x278   : > { %s264_s3 = sshll.u32 %s404_s30, 4  ;;  %s265_s3 = int_to_ptr.vmem [resolvable:$true] %s264_s3 }
 0x279   : > { %s363_s4 = scalar_lea.vmem %s265_s3, 16  ;;  %s369_s5 = scalar_lea.vmem %s265_s3, 32 }
 0x27a   : > { %p364_p7 = scmp.ne.s32.totalorder %s265_s3, %s363_s4  ;;  %p370_p10 = scmp.lt.s32.totalorder %s265_s3, %s265_s3 }
 0x27b   : > { %p371_p11 = scmp.lt.s32.totalorder %s369_s5, %s363_s4 }
 0x27c   : > { %p365_p8 = pnand %p364_p7, %p341_p6 }
 0x27d   : > { %p372_p12 = por %p371_p11, %p370_p10 }
 0x27e   : > { %p366_p9 = pneg %p365_p8 }
 0x280   : > { %p373_p13 = pnand %p372_p12, %p366_p9 }
 0x282   : > { %376 = shalt.err (!%p373_p13)
}
 0x283   : > { %s377_s8 = scalar_lea.hbm %s478_s2, 16 }
 0x284   : > { %p378_p0 = scmp.ne.s32.totalorder %s478_s2, %s377_s8  ;;  %p383_p3 = scmp.lt.u32.totalorder %s377_s8, %s478_s2 }
 0x286   : > { %p379_p1 = pnand %p378_p0, %p341_p6 }
 0x288   : > { %p380_p2 = pneg %p379_p1 }
 0x28a   : > { %p385_p4 = pnand %p383_p3, %p380_p2 }
 0x28c   : > { %388 = shalt.err (!%p385_p4)
}
 0x28d   : > { %338 = dma.vmem_to_hbm [thread:$0]  (%p341_p6), %s265_s3, 16, %s478_s2, [#allocation6]  }
 0x28e   : > { %394 = dma.done.wait (%p341_p6), [#allocation6], 16  }
 0x28f   : > { %396 = vsyncadd (%p341_p6), [#allocation6], 4294967280 }
 0x290 PF: > { %s13_s9 = sadd.s32 1, %s399_s9  }
 0x291   : > { %p10_p5 = scmp.ge.s32.totalorder %s13_s9, 4  }
 0x293   :  { %12 = sbr.rel (!%p10_p5) target bundleno = 1 (0x1), region = 66 }
 0x29a   :  { %277 = vsyncpa [#allocation6], 1 }
 0x29b   :  { %279 = vsyncpa [#allocation6 + $0x1], 1 }

</bundles_post_ra>
